<compile_context>
chip_gen: v6e
topology: v6e:2x2x1
jax: 0.10.0
libtpu: 0.0.40
codegen_flags: <defaults>
</compile_context>

<pallas_src>
import functools

import jax
import jax.numpy as jnp
from jax.experimental import pallas as pl
from jax.experimental.pallas import tpu as pltpu


def _round_up(x, m):
    return ((x + m - 1) // m) * m


def lstm_head_kernel(x_ref, wih_ref, whh_ref, b_ref, wl_ref, bl_ref,
                     out_ref, gx_sc, *, seq_len, batch_pad, hidden_pad):
    Hp = hidden_pad

    # ---- (1) Input projection for ALL timesteps as one MXU matmul ----------
    # x_ref is (T*Bp, D) time-major; bias folded in so only the recurrent
    # matmul stays on the serial critical path.
    gx_sc[...] = (
        jnp.dot(x_ref[...], wih_ref[...], preferred_element_type=jnp.float32)
        + b_ref[...]
    )                                                    # (T*Bp, 4*Hp)

    # ---- (2) Peeled first step: h0 = c0 = 0 ---------------------------------
    # No h @ W_hh matmul; f*c0 == 0 so the f-gate is skipped entirely.
    g0 = gx_sc[pl.ds(0, batch_pad), :]
    i0 = jax.nn.sigmoid(g0[:, 0 * Hp:1 * Hp])
    gg0 = jnp.tanh(g0[:, 2 * Hp:3 * Hp])
    o0 = jax.nn.sigmoid(g0[:, 3 * Hp:4 * Hp])
    c1 = i0 * gg0
    h1 = o0 * jnp.tanh(c1)

    # ---- (3) Remaining sequential LSTM recurrence, fully in-kernel ----------
    def step(t, carry):
        h, c = carry
        # whh_ref indexed inside the dot each step (no big hoisted value).
        gates = gx_sc[pl.ds(t * batch_pad, batch_pad), :] + jnp.dot(
            h, whh_ref[...], preferred_element_type=jnp.float32)  # (Bp, 4*Hp)
        # Packed gate views, PyTorch order i, f, g, o (width Hp each).
        i_g = jax.nn.sigmoid(gates[:, 0 * Hp:1 * Hp])
        f_g = jax.nn.sigmoid(gates[:, 1 * Hp:2 * Hp])
        g_g = jnp.tanh(gates[:, 2 * Hp:3 * Hp])
        o_g = jax.nn.sigmoid(gates[:, 3 * Hp:4 * Hp])
        c_new = f_g * c + i_g * g_g
        h_new = o_g * jnp.tanh(c_new)
        return h_new, c_new

    # T=8 here: full unroll.  For realistic T (48+) use unroll=4..8 and add
    # pl.multiple_of on the pl.ds start.
    h_n, _ = jax.lax.fori_loop(1, seq_len, step, (h1, c1), unroll=True)

    # ---- (4) Fused Linear head, lane-dense (Cp = 128) store -----------------
    out = jnp.dot(h_n, wl_ref[...], preferred_element_type=jnp.float32) + bl_ref[...]
    out_ref[...] = out.astype(out_ref.dtype)


def prepare_params(params):
    """Pad / transpose / gate-pack the weights ONCE, outside the jitted forward.

    Padded hidden units stay exactly 0 through the recurrence (their bias and
    weight columns are zero -> g=tanh(0)=0 -> c=h=0) and the zero-padded
    W_lin rows keep them out of the output.
    """
    f32 = jnp.float32
    D = params["w_ih"].shape[1]
    H = params["w_hh"].shape[1]
    C = params["w_lin"].shape[0]

    Hp = _round_up(H, 32)          # 4*Hp is a multiple of 128 -> lane-dense gates
    Cp = _round_up(C, 128)         # lane-dense output store
    G = 4 * Hp

    wih_t = params["w_ih"].astype(f32).T                   # (D, 4H)
    whh_t = params["w_hh"].astype(f32).T                   # (H, 4H)
    bias = (params["b_ih"] + params["b_hh"]).astype(f32)   # (4H,)

    wih_p = jnp.zeros((D, G), f32)
    whh_p = jnp.zeros((Hp, G), f32)
    b_p = jnp.zeros((1, G), f32)
    for g in range(4):
        wih_p = wih_p.at[:, g * Hp:g * Hp + H].set(wih_t[:, g * H:(g + 1) * H])
        whh_p = whh_p.at[:H, g * Hp:g * Hp + H].set(whh_t[:, g * H:(g + 1) * H])
        b_p = b_p.at[0, g * Hp:g * Hp + H].set(bias[g * H:(g + 1) * H])
    wl_p = jnp.zeros((Hp, Cp), f32).at[:H, :C].set(params["w_lin"].astype(f32).T)
    bl_p = jnp.zeros((1, Cp), f32).at[0, :C].set(params["b_lin"].astype(f32))

    return {"wih": wih_p, "whh": whh_p, "b": b_p, "wl": wl_p, "bl": bl_p}


def mimiciii_lstm_combined_forward(x, prepped, *, num_classes):
    """x: (B, T, D) float32.  Returns (B, num_classes).  Dropout p=0.0 -> identity."""
    B, T, D = x.shape
    Hp, G = prepped["whh"].shape
    Cp = prepped["wl"].shape[1]
    Bp = _round_up(B, 8)           # sublane-align the batch rows

    # Time-major, batch-padded, flattened to (T*Bp, D): one tiny XLA layout
    # pass so the kernel issues a single well-shaped projection matmul.
    x_t = jnp.transpose(x.astype(jnp.float32), (1, 0, 2))    # (T, B, D)
    x_t = jnp.pad(x_t, ((0, 0), (0, Bp - B), (0, 0)))        # (T, Bp, D)
    x_flat = x_t.reshape(T * Bp, D)                          # (T*Bp, D)

    kernel = functools.partial(lstm_head_kernel,
                               seq_len=T, batch_pad=Bp, hidden_pad=Hp)

    grid_spec = pltpu.PrefetchScalarGridSpec(
        num_scalar_prefetch=0,
        # Single step: everything VMEM-resident, weights DMA'd exactly once.
        # (Scaling: tile B on this axis marked "parallel" for v7x's 2 TCs, or
        #  time-chunk the sequence for large T to bound gx_sc.)
        grid=(1,),
        in_specs=[
            pl.BlockSpec((T * Bp, D), lambda i: (0, 0)),   # x (time-major, flat)
            pl.BlockSpec((D, G), lambda i: (0, 0)),        # W_ih^T (gate-packed)
            pl.BlockSpec((Hp, G), lambda i: (0, 0)),       # W_hh^T (gate-packed)
            pl.BlockSpec((1, G), lambda i: (0, 0)),        # b_ih + b_hh
            pl.BlockSpec((Hp, Cp), lambda i: (0, 0)),      # W_lin^T
            pl.BlockSpec((1, Cp), lambda i: (0, 0)),       # b_lin
        ],
        out_specs=pl.BlockSpec((Bp, Cp), lambda i: (0, 0)),
        scratch_shapes=[
            pltpu.VMEM((T * Bp, G), jnp.float32),          # precomputed x-gates
        ],
    )

    out_full = pl.pallas_call(
        kernel,
        out_shape=jax.ShapeDtypeStruct((Bp, Cp), jnp.float32),
        grid_spec=grid_spec,
        compiler_params=pltpu.CompilerParams(
            dimension_semantics=("arbitrary",),
        ),
    )(x_flat, prepped["wih"], prepped["whh"], prepped["b"],
      prepped["wl"], prepped["bl"])

    return out_full[:B, :num_classes]


def reference_forward(x, params):
    """Pure-JAX reference (lax.scan LSTM, PyTorch gate order)."""
    B, T, D = x.shape
    H = params["w_hh"].shape[1]
    wih_t = params["w_ih"].T
    whh_t = params["w_hh"].T
    b = params["b_ih"] + params["b_hh"]

    def step(carry, x_t):
        h, c = carry
        gates = x_t @ wih_t + h @ whh_t + b
        i = jax.nn.sigmoid(gates[:, 0 * H:1 * H])
        f = jax.nn.sigmoid(gates[:, 1 * H:2 * H])
        g = jnp.tanh(gates[:, 2 * H:3 * H])
        o = jax.nn.sigmoid(gates[:, 3 * H:4 * H])
        c = f * c + i * g
        h = o * jnp.tanh(c)
        return (h, c), None

    h0 = jnp.zeros((B, H), jnp.float32)
    c0 = jnp.zeros((B, H), jnp.float32)
    (h_n, _), _ = jax.lax.scan(step, (h0, c0), jnp.transpose(x, (1, 0, 2)))
    return h_n @ params["w_lin"].T + params["b_lin"]


def make_params(key, input_dim, hidden_dim, num_classes):
    k1, k2, k3, k4, k5 = jax.random.split(key, 5)
    scale_ih = 1.0 / jnp.sqrt(input_dim)
    scale_hh = 1.0 / jnp.sqrt(hidden_dim)
    return {
        "w_ih": jax.random.uniform(k1, (4 * hidden_dim, input_dim),
                                   jnp.float32, -scale_ih, scale_ih),
        "w_hh": jax.random.uniform(k2, (4 * hidden_dim, hidden_dim),
                                   jnp.float32, -scale_hh, scale_hh),
        "b_ih": jax.random.uniform(k4, (4 * hidden_dim,),
                                   jnp.float32, -scale_hh, scale_hh),
        "b_hh": jax.random.uniform(k5, (4 * hidden_dim,),
                                   jnp.float32, -scale_hh, scale_hh),
        "w_lin": jax.random.uniform(k3, (num_classes, hidden_dim),
                                    jnp.float32, -scale_hh, scale_hh),
        "b_lin": jnp.zeros((num_classes,), jnp.float32),
    }


if __name__ == "__main__":
    B, T, INPUT_DIM, HIDDEN_DIM, NUM_CLASSES = 2, 8, 16, 32, 1

    key = jax.random.PRNGKey(0)
    kx, kp = jax.random.split(key)
    x = jax.random.normal(kx, (B, T, INPUT_DIM), jnp.float32)
    params = make_params(kp, INPUT_DIM, HIDDEN_DIM, NUM_CLASSES)

    # Weight padding / gate packing done once, outside the jitted forward.
    prepped = jax.block_until_ready(prepare_params(params))

    fwd = jax.jit(functools.partial(mimiciii_lstm_combined_forward,
                                    num_classes=NUM_CLASSES))
    out = jax.block_until_ready(fwd(x, prepped))

    ref = jax.block_until_ready(reference_forward(x, params))
    assert out.shape == (B, NUM_CLASSES)
    assert jnp.allclose(out, ref, atol=1e-4, rtol=1e-4), (out, ref)

    print("KERNEL_OK")
</pallas_src>

<mosaic_0001>
module attributes {stable_mosaic.version = 11 : i64} {
  func.func @lstm_head_kernel(%arg0: i32, %arg1: memref<64x16xf32, #tpu.memory_space<vmem>>, %arg2: memref<16x128xf32, #tpu.memory_space<vmem>>, %arg3: memref<32x128xf32, #tpu.memory_space<vmem>>, %arg4: memref<1x128xf32, #tpu.memory_space<vmem>>, %arg5: memref<32x128xf32, #tpu.memory_space<vmem>>, %arg6: memref<1x128xf32, #tpu.memory_space<vmem>>, %arg7: memref<8x128xf32, #tpu.memory_space<vmem>>, %arg8: memref<64x128xf32, #tpu.memory_space<vmem>>) attributes {dimension_semantics = [#tpu.dimension_semantics<arbitrary>], iteration_bounds = array<i64: 1>, scalar_prefetch = 0 : i64, scratch_operands = 1 : i64, tpu.core_type = #tpu.core_type<tc>, window_params = [{pipeline_mode = #tpu.pipeline_mode<synchronous>, transform_indices = @transform_0, window_bounds = array<i64: 64, 16>}, {pipeline_mode = #tpu.pipeline_mode<synchronous>, transform_indices = @transform_1, window_bounds = array<i64: 16, 128>}, {pipeline_mode = #tpu.pipeline_mode<synchronous>, transform_indices = @transform_2, window_bounds = array<i64: 32, 128>}, {pipeline_mode = #tpu.pipeline_mode<synchronous>, transform_indices = @transform_3, window_bounds = array<i64: 1, 128>}, {pipeline_mode = #tpu.pipeline_mode<synchronous>, transform_indices = @transform_4, window_bounds = array<i64: 32, 128>}, {pipeline_mode = #tpu.pipeline_mode<synchronous>, transform_indices = @transform_5, window_bounds = array<i64: 1, 128>}, {pipeline_mode = #tpu.pipeline_mode<synchronous>, transform_indices = @transform_6, window_bounds = array<i64: 8, 128>}]} {
    %c0 = arith.constant 0 : index
    %c0_0 = arith.constant 0 : index
    %0 = vector.load %arg1[%c0, %c0_0] : memref<64x16xf32, #tpu.memory_space<vmem>>, vector<64x16xf32>
    %c0_1 = arith.constant 0 : index
    %c0_2 = arith.constant 0 : index
    %1 = vector.load %arg2[%c0_1, %c0_2] : memref<16x128xf32, #tpu.memory_space<vmem>>, vector<16x128xf32>
    %cst = arith.constant dense<0.000000e+00> : vector<64x128xf32>
    %2 = tpu.matmul %0, %1, %cst {dimension_numbers = #tpu.dot_dimension_numbers<[1], [0], [0], [1], [0, 0, 1, 1], [], []>} : vector<64x16xf32>, vector<16x128xf32>, vector<64x128xf32> -> vector<64x128xf32>
    %c0_3 = arith.constant 0 : index
    %c0_4 = arith.constant 0 : index
    %3 = vector.load %arg4[%c0_3, %c0_4] : memref<1x128xf32, #tpu.memory_space<vmem>>, vector<1x128xf32>
    %4 = vector.broadcast %3 : vector<1x128xf32> to vector<64x128xf32>
    %5 = arith.addf %2, %4 : vector<64x128xf32>
    %c0_5 = arith.constant 0 : index
    %c0_6 = arith.constant 0 : index
    %6 = vector.load %arg8[%c0_5, %c0_6] : memref<64x128xf32, #tpu.memory_space<vmem>>, vector<64x128xf32>
    tpu.vector_store %arg8[%c0_5, %c0_6], %5 {strides = array<i32>} : memref<64x128xf32, #tpu.memory_space<vmem>>, vector<64x128xf32>,
    %c0_7 = arith.constant 0 : index
    %c0_8 = arith.constant 0 : index
    %7 = vector.load %arg8[%c0_7, %c0_8] : memref<64x128xf32, #tpu.memory_space<vmem>>, vector<8x128xf32>
    %8 = vector.extract_strided_slice %7 {offsets = [0, 0], sizes = [8, 32], strides = [1, 1]} : vector<8x128xf32> to vector<8x32xf32>
    %9 = arith.negf %8 : vector<8x32xf32>
    %10 = math.exp %9 : vector<8x32xf32>
    %cst_9 = arith.constant 1.000000e+00 : f32
    %11 = vector.broadcast %cst_9 : f32 to vector<8x32xf32>
    %12 = arith.addf %11, %10 : vector<8x32xf32>
    %13 = arith.divf %11, %12 : vector<8x32xf32>
    %14 = vector.extract_strided_slice %7 {offsets = [0, 64], sizes = [8, 32], strides = [1, 1]} : vector<8x128xf32> to vector<8x32xf32>
    %15 = math.tanh %14 : vector<8x32xf32>
    %16 = vector.extract_strided_slice %7 {offsets = [0, 96], sizes = [8, 32], strides = [1, 1]} : vector<8x128xf32> to vector<8x32xf32>
    %17 = arith.negf %16 : vector<8x32xf32>
    %18 = math.exp %17 : vector<8x32xf32>
    %cst_10 = arith.constant 1.000000e+00 : f32
    %19 = vector.broadcast %cst_10 : f32 to vector<8x32xf32>
    %20 = arith.addf %19, %18 : vector<8x32xf32>
    %21 = arith.divf %19, %20 : vector<8x32xf32>
    %22 = arith.mulf %13, %15 : vector<8x32xf32>
    %23 = math.tanh %22 : vector<8x32xf32>
    %24 = arith.mulf %21, %23 : vector<8x32xf32>
    %c1_i32 = arith.constant 1 : i32
    %c8_i32 = arith.constant 8 : i32
    %25 = arith.muli %c1_i32, %c8_i32 : i32
    %26 = arith.index_cast %25 : i32 to index
    %c0_11 = arith.constant 0 : index
    %27 = vector.load %arg8[%26, %c0_11] : memref<64x128xf32, #tpu.memory_space<vmem>>, vector<8x128xf32>
    %c0_12 = arith.constant 0 : index
    %c0_13 = arith.constant 0 : index
    %28 = vector.load %arg3[%c0_12, %c0_13] : memref<32x128xf32, #tpu.memory_space<vmem>>, vector<32x128xf32>
    %cst_14 = arith.constant dense<0.000000e+00> : vector<8x128xf32>
    %29 = tpu.matmul %24, %28, %cst_14 {dimension_numbers = #tpu.dot_dimension_numbers<[1], [0], [0], [1], [0, 0, 1, 1], [], []>} : vector<8x32xf32>, vector<32x128xf32>, vector<8x128xf32> -> vector<8x128xf32>
    %30 = arith.addf %27, %29 : vector<8x128xf32>
    %31 = vector.extract_strided_slice %30 {offsets = [0, 0], sizes = [8, 32], strides = [1, 1]} : vector<8x128xf32> to vector<8x32xf32>
    %32 = arith.negf %31 : vector<8x32xf32>
    %33 = math.exp %32 : vector<8x32xf32>
    %cst_15 = arith.constant 1.000000e+00 : f32
    %34 = vector.broadcast %cst_15 : f32 to vector<8x32xf32>
    %35 = arith.addf %34, %33 : vector<8x32xf32>
    %36 = arith.divf %34, %35 : vector<8x32xf32>
    %37 = vector.extract_strided_slice %30 {offsets = [0, 32], sizes = [8, 32], strides = [1, 1]} : vector<8x128xf32> to vector<8x32xf32>
    %38 = arith.negf %37 : vector<8x32xf32>
    %39 = math.exp %38 : vector<8x32xf32>
    %cst_16 = arith.constant 1.000000e+00 : f32
    %40 = vector.broadcast %cst_16 : f32 to vector<8x32xf32>
    %41 = arith.addf %40, %39 : vector<8x32xf32>
    %42 = arith.divf %40, %41 : vector<8x32xf32>
    %43 = vector.extract_strided_slice %30 {offsets = [0, 64], sizes = [8, 32], strides = [1, 1]} : vector<8x128xf32> to vector<8x32xf32>
    %44 = math.tanh %43 : vector<8x32xf32>
    %45 = vector.extract_strided_slice %30 {offsets = [0, 96], sizes = [8, 32], strides = [1, 1]} : vector<8x128xf32> to vector<8x32xf32>
    %46 = arith.negf %45 : vector<8x32xf32>
    %47 = math.exp %46 : vector<8x32xf32>
    %cst_17 = arith.constant 1.000000e+00 : f32
    %48 = vector.broadcast %cst_17 : f32 to vector<8x32xf32>
    %49 = arith.addf %48, %47 : vector<8x32xf32>
    %50 = arith.divf %48, %49 : vector<8x32xf32>
    %51 = arith.mulf %42, %22 : vector<8x32xf32>
    %52 = arith.mulf %36, %44 : vector<8x32xf32>
    %53 = arith.addf %51, %52 : vector<8x32xf32>
    %54 = math.tanh %53 : vector<8x32xf32>
    %55 = arith.mulf %50, %54 : vector<8x32xf32>
    %c2_i32 = arith.constant 2 : i32
    %c8_i32_18 = arith.constant 8 : i32
    %56 = arith.muli %c2_i32, %c8_i32_18 : i32
    %57 = arith.index_cast %56 : i32 to index
    %c0_19 = arith.constant 0 : index
    %58 = vector.load %arg8[%57, %c0_19] : memref<64x128xf32, #tpu.memory_space<vmem>>, vector<8x128xf32>
    %c0_20 = arith.constant 0 : index
    %c0_21 = arith.constant 0 : index
    %59 = vector.load %arg3[%c0_20, %c0_21] : memref<32x128xf32, #tpu.memory_space<vmem>>, vector<32x128xf32>
    %cst_22 = arith.constant dense<0.000000e+00> : vector<8x128xf32>
    %60 = tpu.matmul %55, %59, %cst_22 {dimension_numbers = #tpu.dot_dimension_numbers<[1], [0], [0], [1], [0, 0, 1, 1], [], []>} : vector<8x32xf32>, vector<32x128xf32>, vector<8x128xf32> -> vector<8x128xf32>
    %61 = arith.addf %58, %60 : vector<8x128xf32>
    %62 = vector.extract_strided_slice %61 {offsets = [0, 0], sizes = [8, 32], strides = [1, 1]} : vector<8x128xf32> to vector<8x32xf32>
    %63 = arith.negf %62 : vector<8x32xf32>
    %64 = math.exp %63 : vector<8x32xf32>
    %cst_23 = arith.constant 1.000000e+00 : f32
    %65 = vector.broadcast %cst_23 : f32 to vector<8x32xf32>
    %66 = arith.addf %65, %64 : vector<8x32xf32>
    %67 = arith.divf %65, %66 : vector<8x32xf32>
    %68 = vector.extract_strided_slice %61 {offsets = [0, 32], sizes = [8, 32], strides = [1, 1]} : vector<8x128xf32> to vector<8x32xf32>
    %69 = arith.negf %68 : vector<8x32xf32>
    %70 = math.exp %69 : vector<8x32xf32>
    %cst_24 = arith.constant 1.000000e+00 : f32
    %71 = vector.broadcast %cst_24 : f32 to vector<8x32xf32>
    %72 = arith.addf %71, %70 : vector<8x32xf32>
    %73 = arith.divf %71, %72 : vector<8x32xf32>
    %74 = vector.extract_strided_slice %61 {offsets = [0, 64], sizes = [8, 32], strides = [1, 1]} : vector<8x128xf32> to vector<8x32xf32>
    %75 = math.tanh %74 : vector<8x32xf32>
    %76 = vector.extract_strided_slice %61 {offsets = [0, 96], sizes = [8, 32], strides = [1, 1]} : vector<8x128xf32> to vector<8x32xf32>
    %77 = arith.negf %76 : vector<8x32xf32>
    %78 = math.exp %77 : vector<8x32xf32>
    %cst_25 = arith.constant 1.000000e+00 : f32
    %79 = vector.broadcast %cst_25 : f32 to vector<8x32xf32>
    %80 = arith.addf %79, %78 : vector<8x32xf32>
    %81 = arith.divf %79, %80 : vector<8x32xf32>
    %82 = arith.mulf %73, %53 : vector<8x32xf32>
    %83 = arith.mulf %67, %75 : vector<8x32xf32>
    %84 = arith.addf %82, %83 : vector<8x32xf32>
    %85 = math.tanh %84 : vector<8x32xf32>
    %86 = arith.mulf %81, %85 : vector<8x32xf32>
    %c3_i32 = arith.constant 3 : i32
    %c8_i32_26 = arith.constant 8 : i32
    %87 = arith.muli %c3_i32, %c8_i32_26 : i32
    %88 = arith.index_cast %87 : i32 to index
    %c0_27 = arith.constant 0 : index
    %89 = vector.load %arg8[%88, %c0_27] : memref<64x128xf32, #tpu.memory_space<vmem>>, vector<8x128xf32>
    %c0_28 = arith.constant 0 : index
    %c0_29 = arith.constant 0 : index
    %90 = vector.load %arg3[%c0_28, %c0_29] : memref<32x128xf32, #tpu.memory_space<vmem>>, vector<32x128xf32>
    %cst_30 = arith.constant dense<0.000000e+00> : vector<8x128xf32>
    %91 = tpu.matmul %86, %90, %cst_30 {dimension_numbers = #tpu.dot_dimension_numbers<[1], [0], [0], [1], [0, 0, 1, 1], [], []>} : vector<8x32xf32>, vector<32x128xf32>, vector<8x128xf32> -> vector<8x128xf32>
    %92 = arith.addf %89, %91 : vector<8x128xf32>
    %93 = vector.extract_strided_slice %92 {offsets = [0, 0], sizes = [8, 32], strides = [1, 1]} : vector<8x128xf32> to vector<8x32xf32>
    %94 = arith.negf %93 : vector<8x32xf32>
    %95 = math.exp %94 : vector<8x32xf32>
    %cst_31 = arith.constant 1.000000e+00 : f32
    %96 = vector.broadcast %cst_31 : f32 to vector<8x32xf32>
    %97 = arith.addf %96, %95 : vector<8x32xf32>
    %98 = arith.divf %96, %97 : vector<8x32xf32>
    %99 = vector.extract_strided_slice %92 {offsets = [0, 32], sizes = [8, 32], strides = [1, 1]} : vector<8x128xf32> to vector<8x32xf32>
    %100 = arith.negf %99 : vector<8x32xf32>
    %101 = math.exp %100 : vector<8x32xf32>
    %cst_32 = arith.constant 1.000000e+00 : f32
    %102 = vector.broadcast %cst_32 : f32 to vector<8x32xf32>
    %103 = arith.addf %102, %101 : vector<8x32xf32>
    %104 = arith.divf %102, %103 : vector<8x32xf32>
    %105 = vector.extract_strided_slice %92 {offsets = [0, 64], sizes = [8, 32], strides = [1, 1]} : vector<8x128xf32> to vector<8x32xf32>
    %106 = math.tanh %105 : vector<8x32xf32>
    %107 = vector.extract_strided_slice %92 {offsets = [0, 96], sizes = [8, 32], strides = [1, 1]} : vector<8x128xf32> to vector<8x32xf32>
    %108 = arith.negf %107 : vector<8x32xf32>
    %109 = math.exp %108 : vector<8x32xf32>
    %cst_33 = arith.constant 1.000000e+00 : f32
    %110 = vector.broadcast %cst_33 : f32 to vector<8x32xf32>
    %111 = arith.addf %110, %109 : vector<8x32xf32>
    %112 = arith.divf %110, %111 : vector<8x32xf32>
    %113 = arith.mulf %104, %84 : vector<8x32xf32>
    %114 = arith.mulf %98, %106 : vector<8x32xf32>
    %115 = arith.addf %113, %114 : vector<8x32xf32>
    %116 = math.tanh %115 : vector<8x32xf32>
    %117 = arith.mulf %112, %116 : vector<8x32xf32>
    %c4_i32 = arith.constant 4 : i32
    %c8_i32_34 = arith.constant 8 : i32
    %118 = arith.muli %c4_i32, %c8_i32_34 : i32
    %119 = arith.index_cast %118 : i32 to index
    %c0_35 = arith.constant 0 : index
    %120 = vector.load %arg8[%119, %c0_35] : memref<64x128xf32, #tpu.memory_space<vmem>>, vector<8x128xf32>
    %c0_36 = arith.constant 0 : index
    %c0_37 = arith.constant 0 : index
    %121 = vector.load %arg3[%c0_36, %c0_37] : memref<32x128xf32, #tpu.memory_space<vmem>>, vector<32x128xf32>
    %cst_38 = arith.constant dense<0.000000e+00> : vector<8x128xf32>
    %122 = tpu.matmul %117, %121, %cst_38 {dimension_numbers = #tpu.dot_dimension_numbers<[1], [0], [0], [1], [0, 0, 1, 1], [], []>} : vector<8x32xf32>, vector<32x128xf32>, vector<8x128xf32> -> vector<8x128xf32>
    %123 = arith.addf %120, %122 : vector<8x128xf32>
    %124 = vector.extract_strided_slice %123 {offsets = [0, 0], sizes = [8, 32], strides = [1, 1]} : vector<8x128xf32> to vector<8x32xf32>
    %125 = arith.negf %124 : vector<8x32xf32>
    %126 = math.exp %125 : vector<8x32xf32>
    %cst_39 = arith.constant 1.000000e+00 : f32
    %127 = vector.broadcast %cst_39 : f32 to vector<8x32xf32>
    %128 = arith.addf %127, %126 : vector<8x32xf32>
    %129 = arith.divf %127, %128 : vector<8x32xf32>
    %130 = vector.extract_strided_slice %123 {offsets = [0, 32], sizes = [8, 32], strides = [1, 1]} : vector<8x128xf32> to vector<8x32xf32>
    %131 = arith.negf %130 : vector<8x32xf32>
    %132 = math.exp %131 : vector<8x32xf32>
    %cst_40 = arith.constant 1.000000e+00 : f32
    %133 = vector.broadcast %cst_40 : f32 to vector<8x32xf32>
    %134 = arith.addf %133, %132 : vector<8x32xf32>
    %135 = arith.divf %133, %134 : vector<8x32xf32>
    %136 = vector.extract_strided_slice %123 {offsets = [0, 64], sizes = [8, 32], strides = [1, 1]} : vector<8x128xf32> to vector<8x32xf32>
    %137 = math.tanh %136 : vector<8x32xf32>
    %138 = vector.extract_strided_slice %123 {offsets = [0, 96], sizes = [8, 32], strides = [1, 1]} : vector<8x128xf32> to vector<8x32xf32>
    %139 = arith.negf %138 : vector<8x32xf32>
    %140 = math.exp %139 : vector<8x32xf32>
    %cst_41 = arith.constant 1.000000e+00 : f32
    %141 = vector.broadcast %cst_41 : f32 to vector<8x32xf32>
    %142 = arith.addf %141, %140 : vector<8x32xf32>
    %143 = arith.divf %141, %142 : vector<8x32xf32>
    %144 = arith.mulf %135, %115 : vector<8x32xf32>
    %145 = arith.mulf %129, %137 : vector<8x32xf32>
    %146 = arith.addf %144, %145 : vector<8x32xf32>
    %147 = math.tanh %146 : vector<8x32xf32>
    %148 = arith.mulf %143, %147 : vector<8x32xf32>
    %c5_i32 = arith.constant 5 : i32
    %c8_i32_42 = arith.constant 8 : i32
    %149 = arith.muli %c5_i32, %c8_i32_42 : i32
    %150 = arith.index_cast %149 : i32 to index
    %c0_43 = arith.constant 0 : index
    %151 = vector.load %arg8[%150, %c0_43] : memref<64x128xf32, #tpu.memory_space<vmem>>, vector<8x128xf32>
    %c0_44 = arith.constant 0 : index
    %c0_45 = arith.constant 0 : index
    %152 = vector.load %arg3[%c0_44, %c0_45] : memref<32x128xf32, #tpu.memory_space<vmem>>, vector<32x128xf32>
    %cst_46 = arith.constant dense<0.000000e+00> : vector<8x128xf32>
    %153 = tpu.matmul %148, %152, %cst_46 {dimension_numbers = #tpu.dot_dimension_numbers<[1], [0], [0], [1], [0, 0, 1, 1], [], []>} : vector<8x32xf32>, vector<32x128xf32>, vector<8x128xf32> -> vector<8x128xf32>
    %154 = arith.addf %151, %153 : vector<8x128xf32>
    %155 = vector.extract_strided_slice %154 {offsets = [0, 0], sizes = [8, 32], strides = [1, 1]} : vector<8x128xf32> to vector<8x32xf32>
    %156 = arith.negf %155 : vector<8x32xf32>
    %157 = math.exp %156 : vector<8x32xf32>
    %cst_47 = arith.constant 1.000000e+00 : f32
    %158 = vector.broadcast %cst_47 : f32 to vector<8x32xf32>
    %159 = arith.addf %158, %157 : vector<8x32xf32>
    %160 = arith.divf %158, %159 : vector<8x32xf32>
    %161 = vector.extract_strided_slice %154 {offsets = [0, 32], sizes = [8, 32], strides = [1, 1]} : vector<8x128xf32> to vector<8x32xf32>
    %162 = arith.negf %161 : vector<8x32xf32>
    %163 = math.exp %162 : vector<8x32xf32>
    %cst_48 = arith.constant 1.000000e+00 : f32
    %164 = vector.broadcast %cst_48 : f32 to vector<8x32xf32>
    %165 = arith.addf %164, %163 : vector<8x32xf32>
    %166 = arith.divf %164, %165 : vector<8x32xf32>
    %167 = vector.extract_strided_slice %154 {offsets = [0, 64], sizes = [8, 32], strides = [1, 1]} : vector<8x128xf32> to vector<8x32xf32>
    %168 = math.tanh %167 : vector<8x32xf32>
    %169 = vector.extract_strided_slice %154 {offsets = [0, 96], sizes = [8, 32], strides = [1, 1]} : vector<8x128xf32> to vector<8x32xf32>
    %170 = arith.negf %169 : vector<8x32xf32>
    %171 = math.exp %170 : vector<8x32xf32>
    %cst_49 = arith.constant 1.000000e+00 : f32
    %172 = vector.broadcast %cst_49 : f32 to vector<8x32xf32>
    %173 = arith.addf %172, %171 : vector<8x32xf32>
    %174 = arith.divf %172, %173 : vector<8x32xf32>
    %175 = arith.mulf %166, %146 : vector<8x32xf32>
    %176 = arith.mulf %160, %168 : vector<8x32xf32>
    %177 = arith.addf %175, %176 : vector<8x32xf32>
    %178 = math.tanh %177 : vector<8x32xf32>
    %179 = arith.mulf %174, %178 : vector<8x32xf32>
    %c6_i32 = arith.constant 6 : i32
    %c8_i32_50 = arith.constant 8 : i32
    %180 = arith.muli %c6_i32, %c8_i32_50 : i32
    %181 = arith.index_cast %180 : i32 to index
    %c0_51 = arith.constant 0 : index
    %182 = vector.load %arg8[%181, %c0_51] : memref<64x128xf32, #tpu.memory_space<vmem>>, vector<8x128xf32>
    %c0_52 = arith.constant 0 : index
    %c0_53 = arith.constant 0 : index
    %183 = vector.load %arg3[%c0_52, %c0_53] : memref<32x128xf32, #tpu.memory_space<vmem>>, vector<32x128xf32>
    %cst_54 = arith.constant dense<0.000000e+00> : vector<8x128xf32>
    %184 = tpu.matmul %179, %183, %cst_54 {dimension_numbers = #tpu.dot_dimension_numbers<[1], [0], [0], [1], [0, 0, 1, 1], [], []>} : vector<8x32xf32>, vector<32x128xf32>, vector<8x128xf32> -> vector<8x128xf32>
    %185 = arith.addf %182, %184 : vector<8x128xf32>
    %186 = vector.extract_strided_slice %185 {offsets = [0, 0], sizes = [8, 32], strides = [1, 1]} : vector<8x128xf32> to vector<8x32xf32>
    %187 = arith.negf %186 : vector<8x32xf32>
    %188 = math.exp %187 : vector<8x32xf32>
    %cst_55 = arith.constant 1.000000e+00 : f32
    %189 = vector.broadcast %cst_55 : f32 to vector<8x32xf32>
    %190 = arith.addf %189, %188 : vector<8x32xf32>
    %191 = arith.divf %189, %190 : vector<8x32xf32>
    %192 = vector.extract_strided_slice %185 {offsets = [0, 32], sizes = [8, 32], strides = [1, 1]} : vector<8x128xf32> to vector<8x32xf32>
    %193 = arith.negf %192 : vector<8x32xf32>
    %194 = math.exp %193 : vector<8x32xf32>
    %cst_56 = arith.constant 1.000000e+00 : f32
    %195 = vector.broadcast %cst_56 : f32 to vector<8x32xf32>
    %196 = arith.addf %195, %194 : vector<8x32xf32>
    %197 = arith.divf %195, %196 : vector<8x32xf32>
    %198 = vector.extract_strided_slice %185 {offsets = [0, 64], sizes = [8, 32], strides = [1, 1]} : vector<8x128xf32> to vector<8x32xf32>
    %199 = math.tanh %198 : vector<8x32xf32>
    %200 = vector.extract_strided_slice %185 {offsets = [0, 96], sizes = [8, 32], strides = [1, 1]} : vector<8x128xf32> to vector<8x32xf32>
    %201 = arith.negf %200 : vector<8x32xf32>
    %202 = math.exp %201 : vector<8x32xf32>
    %cst_57 = arith.constant 1.000000e+00 : f32
    %203 = vector.broadcast %cst_57 : f32 to vector<8x32xf32>
    %204 = arith.addf %203, %202 : vector<8x32xf32>
    %205 = arith.divf %203, %204 : vector<8x32xf32>
    %206 = arith.mulf %197, %177 : vector<8x32xf32>
    %207 = arith.mulf %191, %199 : vector<8x32xf32>
    %208 = arith.addf %206, %207 : vector<8x32xf32>
    %209 = math.tanh %208 : vector<8x32xf32>
    %210 = arith.mulf %205, %209 : vector<8x32xf32>
    %c7_i32 = arith.constant 7 : i32
    %c8_i32_58 = arith.constant 8 : i32
    %211 = arith.muli %c7_i32, %c8_i32_58 : i32
    %212 = arith.index_cast %211 : i32 to index
    %c0_59 = arith.constant 0 : index
    %213 = vector.load %arg8[%212, %c0_59] : memref<64x128xf32, #tpu.memory_space<vmem>>, vector<8x128xf32>
    %c0_60 = arith.constant 0 : index
    %c0_61 = arith.constant 0 : index
    %214 = vector.load %arg3[%c0_60, %c0_61] : memref<32x128xf32, #tpu.memory_space<vmem>>, vector<32x128xf32>
    %cst_62 = arith.constant dense<0.000000e+00> : vector<8x128xf32>
    %215 = tpu.matmul %210, %214, %cst_62 {dimension_numbers = #tpu.dot_dimension_numbers<[1], [0], [0], [1], [0, 0, 1, 1], [], []>} : vector<8x32xf32>, vector<32x128xf32>, vector<8x128xf32> -> vector<8x128xf32>
    %216 = arith.addf %213, %215 : vector<8x128xf32>
    %217 = vector.extract_strided_slice %216 {offsets = [0, 0], sizes = [8, 32], strides = [1, 1]} : vector<8x128xf32> to vector<8x32xf32>
    %218 = arith.negf %217 : vector<8x32xf32>
    %219 = math.exp %218 : vector<8x32xf32>
    %cst_63 = arith.constant 1.000000e+00 : f32
    %220 = vector.broadcast %cst_63 : f32 to vector<8x32xf32>
    %221 = arith.addf %220, %219 : vector<8x32xf32>
    %222 = arith.divf %220, %221 : vector<8x32xf32>
    %223 = vector.extract_strided_slice %216 {offsets = [0, 32], sizes = [8, 32], strides = [1, 1]} : vector<8x128xf32> to vector<8x32xf32>
    %224 = arith.negf %223 : vector<8x32xf32>
    %225 = math.exp %224 : vector<8x32xf32>
    %cst_64 = arith.constant 1.000000e+00 : f32
    %226 = vector.broadcast %cst_64 : f32 to vector<8x32xf32>
    %227 = arith.addf %226, %225 : vector<8x32xf32>
    %228 = arith.divf %226, %227 : vector<8x32xf32>
    %229 = vector.extract_strided_slice %216 {offsets = [0, 64], sizes = [8, 32], strides = [1, 1]} : vector<8x128xf32> to vector<8x32xf32>
    %230 = math.tanh %229 : vector<8x32xf32>
    %231 = vector.extract_strided_slice %216 {offsets = [0, 96], sizes = [8, 32], strides = [1, 1]} : vector<8x128xf32> to vector<8x32xf32>
    %232 = arith.negf %231 : vector<8x32xf32>
    %233 = math.exp %232 : vector<8x32xf32>
    %cst_65 = arith.constant 1.000000e+00 : f32
    %234 = vector.broadcast %cst_65 : f32 to vector<8x32xf32>
    %235 = arith.addf %234, %233 : vector<8x32xf32>
    %236 = arith.divf %234, %235 : vector<8x32xf32>
    %237 = arith.mulf %228, %208 : vector<8x32xf32>
    %238 = arith.mulf %222, %230 : vector<8x32xf32>
    %239 = arith.addf %237, %238 : vector<8x32xf32>
    %240 = math.tanh %239 : vector<8x32xf32>
    %241 = arith.mulf %236, %240 : vector<8x32xf32>
    %c7_i32_66 = arith.constant 7 : i32
    %c0_67 = arith.constant 0 : index
    %c0_68 = arith.constant 0 : index
    %242 = vector.load %arg5[%c0_67, %c0_68] : memref<32x128xf32, #tpu.memory_space<vmem>>, vector<32x128xf32>
    %cst_69 = arith.constant dense<0.000000e+00> : vector<8x128xf32>
    %243 = tpu.matmul %241, %242, %cst_69 {dimension_numbers = #tpu.dot_dimension_numbers<[1], [0], [0], [1], [0, 0, 1, 1], [], []>} : vector<8x32xf32>, vector<32x128xf32>, vector<8x128xf32> -> vector<8x128xf32>
    %c0_70 = arith.constant 0 : index
    %c0_71 = arith.constant 0 : index
    %244 = vector.load %arg6[%c0_70, %c0_71] : memref<1x128xf32, #tpu.memory_space<vmem>>, vector<1x128xf32>
    %245 = vector.broadcast %244 : vector<1x128xf32> to vector<8x128xf32>
    %246 = arith.addf %243, %245 : vector<8x128xf32>
    %c0_72 = arith.constant 0 : index
    %c0_73 = arith.constant 0 : index
    %247 = vector.load %arg7[%c0_72, %c0_73] : memref<8x128xf32, #tpu.memory_space<vmem>>, vector<8x128xf32>
    tpu.vector_store %arg7[%c0_72, %c0_73], %246 {strides = array<i32>} : memref<8x128xf32, #tpu.memory_space<vmem>>, vector<8x128xf32>,
    return
  }
  func.func @transform_0(%arg0: i32) -> (i32, i32) {
    %c0_i32 = arith.constant 0 : i32
    %c0_i32_0 = arith.constant 0 : i32
    %c0_i32_1 = arith.constant 0 : i32
    return %c0_i32, %c0_i32_0 : i32, i32
  }
  func.func @transform_1(%arg0: i32) -> (i32, i32) {
    %c0_i32 = arith.constant 0 : i32
    %c0_i32_0 = arith.constant 0 : i32
    %c0_i32_1 = arith.constant 0 : i32
    return %c0_i32, %c0_i32_0 : i32, i32
  }
  func.func @transform_2(%arg0: i32) -> (i32, i32) {
    %c0_i32 = arith.constant 0 : i32
    %c0_i32_0 = arith.constant 0 : i32
    %c0_i32_1 = arith.constant 0 : i32
    return %c0_i32, %c0_i32_0 : i32, i32
  }
  func.func @transform_3(%arg0: i32) -> (i32, i32) {
    %c0_i32 = arith.constant 0 : i32
    %c0_i32_0 = arith.constant 0 : i32
    %c0_i32_1 = arith.constant 0 : i32
    return %c0_i32, %c0_i32_0 : i32, i32
  }
  func.func @transform_4(%arg0: i32) -> (i32, i32) {
    %c0_i32 = arith.constant 0 : i32
    %c0_i32_0 = arith.constant 0 : i32
    %c0_i32_1 = arith.constant 0 : i32
    return %c0_i32, %c0_i32_0 : i32, i32
  }
  func.func @transform_5(%arg0: i32) -> (i32, i32) {
    %c0_i32 = arith.constant 0 : i32
    %c0_i32_0 = arith.constant 0 : i32
    %c0_i32_1 = arith.constant 0 : i32
    return %c0_i32, %c0_i32_0 : i32, i32
  }
  func.func @transform_6(%arg0: i32) -> (i32, i32) {
    %c0_i32 = arith.constant 0 : i32
    %c0_i32_0 = arith.constant 0 : i32
    %c0_i32_1 = arith.constant 0 : i32
    return %c0_i32, %c0_i32_0 : i32, i32
  }
}

</mosaic_0001>

<bundles_post_ra>
// kernel: mimiciii_lstm_combined_forward.1
= control target key start
LH: loop header
LB: loop body
LE: loop exit
PB: predicated region body
PF: predicated region fallthrough
CT: control target
= control target key end

     0   :  { %vm40_vm0 = vcmask 130048   ;;  %s1253_s30 = smov 64   ;;  %v1254_v15 = vmov 0.0   ;;  %vm1255_vm1 = vmmov 0   ;;  %s1257_s14 = smov 32   ;;  %vm205_vm2 = vcmask 261120   ;;  %s1509_s1 = inlined_call_operand.vmem [shape: f32[16,128], index: 1, kind: input, shape index: {}]   ;;  %s1510_s0 = inlined_call_operand.vmem [shape: f32[64,16], index: 0, kind: input, shape index: {}]   ;;  %s1511_s3 = inlined_call_operand.vmem [shape: f32[1,128], index: 3, kind: input, shape index: {}]   ;;  %s1512_s2 = inlined_call_operand.vmem [shape: f32[32,128], index: 2, kind: input, shape index: {}]   ;;  %s1513_s4 = inlined_call_operand.vmem [shape: f32[32,128], index: 4, kind: input, shape index: {}]   ;;  %s1514_s5 = inlined_call_operand.vmem [shape: f32[1,128], index: 5, kind: input, shape index: {}]   ;;  %s1515_s6 = inlined_call_operand.vmem [shape: f32[8,128], index: 6, kind: output, shape index: {}]  }
   0x1   :  { %v32_v0 = vld [vmem:[%s1509_s1 + $0x8] sm:$0xff]  ;;  %v31_v1 = vld [vmem:[%s1509_s1] sm:$0xff]  ;;  %1096 = vmatprep.subr.mxu1 %v1254_v15  ;;  %v1320_v16 = vld [vmem:[%s1512_s2 + $0x18] sm:$0xff]  ;;  %1104 = vmatprep.mubr.msk.f32.mxu1 %vm1255_vm1, %v1254_v15 }
   0x2   :  { %v23_v2 = vld [vmem:[%s1510_s0] sm:$0xff]  ;;  %1080 = vmatprep.subr.mxu0 %v32_v0  ;;  %v24_v3 = vld [vmem:[%s1510_s0 + $0x8] sm:$0xff]  ;;  %v1325_v17 = vld [vmem:[%s1512_s2 + $0x10] sm:$0xff]  ;;  %1097 = vmatpush3.msra.mxu1 %v1320_v16 }
   0x3   :  { %1084 = vmatprep.mubr.msk.f32.mxu0 %vm40_vm0, %v23_v2  ;;  %1081 = vmatpush3.msra.mxu0 %v32_v0  ;;  %v1312_v5 = vld [vmem:[%s1511_s3] ss:$0 sm:$0xff]  ;;  %v1335_v18 = vld [vmem:[%s1512_s2 + $0x8] sm:$0xff]  ;;  %v25_v39 = vld [vmem:[%s1510_s0 + $0x10] sm:$0xff] }
   0x4   :  { %1082 = vmatprep.subr.mxu0 %v31_v1  ;;  %1098 = vmatprep.subr.mxu1 %v1254_v15  ;;  %v1344_v19 = vld [vmem:[%s1512_s2] sm:$0xff]  ;;  %s1256_s2 = smov 96   ;;  %v26_v40 = vld [vmem:[%s1510_s0 + $0x18] sm:$0xff]  ;;  %v28_v62 = vld [vmem:[%s1510_s0 + $0x28] sm:$0xff] }
   0x5   :  { %1083 = vmatpush3.msra.mxu0 %v31_v1  ;;  %1099 = vmatpush3.msra.mxu1 %v1325_v17  ;;  %v27_v61 = vld [vmem:[%s1510_s0 + $0x20] sm:$0xff]  ;;  %v29_v63 = vld [vmem:[%s1510_s0 + $0x30] sm:$0xff]  ;;  %v30_v0 = vld [vmem:[%s1510_s0 + $0x38] sm:$0xff] }
   0x6   :  { %1085 = vmatmul.mubr.msk.f32.vlgmr.msra.gmra.mxu0 %vm40_vm0, %v24_v3  ;;  %1118 = vmatprep.subr.mxu0 %v1254_v15 }
   0x7   :  { %1119 = vmatpush3.msra.mxu0 %v1320_v16  ;;  %1100 = vmatprep.subr.mxu1 %v1254_v15 }
   0x8   :  { %1120 = vmatprep.subr.mxu0 %v1254_v15  ;;  %1101 = vmatpush3.msra.mxu1 %v1335_v18 }
   0x9   :  { %1121 = vmatpush3.msra.mxu0 %v1325_v17  ;;  %1102 = vmatprep.subr.mxu1 %v1254_v15 }
   0xa   :  { %1122 = vmatprep.subr.mxu0 %v1254_v15  ;;  %1103 = vmatpush3.msra.mxu1 %v1344_v19 }
   0xb   :  { %1123 = vmatpush3.msra.mxu0 %v1335_v18  ;;  %1107 = vmatprep.subr.mxu1 %v1254_v15 }
   0xc   :  { %1124 = vmatprep.subr.mxu0 %v1254_v15  ;;  %1087 = vmatprep.mubr.msk.f32.mxu0 %vm40_vm0, %v25_v39 }
   0xd   :  { %1125 = vmatpush3.msra.mxu0 %v1344_v19 }
   0xe   :  { %1140 = vmatprep.subr.mxu0 %v1254_v15  ;;  %1088 = vmatmul.mubr.msk.f32.gmra.mxu0 %vm40_vm0, %v26_v40 }
   0xf   :  { %1090 = vmatprep.mubr.msk.f32.mxu0 %vm40_vm0, %v27_v61 }
  0x12   :  { %1091 = vmatmul.mubr.msk.f32.gmra.mxu0 %vm40_vm0, %v28_v62 }
  0x13   :  { %1093 = vmatprep.mubr.msk.f32.mxu0 %vm40_vm0, %v29_v63 }
  0x16   :  { %1094 = vmatmul.mubr.msk.f32.gmra.mxu0 %vm40_vm0, %v30_v0 }
  0x17   :  { %1126 = vmatprep.mubr.msk.f32.mxu0 %vm1255_vm1, %v1254_v15 }
  0xc6   :  { %v1307_v4 = vpop.f32.mrf.mxu0 }
  0xc7   :  { %v137_v24 = vadd.f32 %v1307_v4, %v1312_v5 }
  0xc8   :  { %v131_v6 = vpop.f32.mrf.mxu0 }
  0xc9   :  { %v132_v7 = vadd.f32 %v1312_v5, %v131_v6 }
  0xcb   :  { %1189 = vtanh.f32 %v132_v7  ;;  %v1013_v9 = vmul.f32 -1.442695, %v132_v7 }
  0xcd   :  { %1191 = vpow2.f32 %v1013_v9 }
  0xce   :  { %v1089_v45 = vpop.f32.mrf.mxu0 }
  0xd0   :  { %v141_v46 = vpop.f32.mrf.mxu0 }
  0xd1   :  { %v142_v47 = vadd.f32 %v1312_v5, %v141_v46 }
  0xd2   :  { %v1428_v6 = vpop.f32.mrf.mxu0 }
  0xd4   :  { %v151_v7 = vpop.f32.mrf.mxu0 }
  0xd8   :  { %v1190_v8 = vpop.eup %1189 }
  0xd9   :  { %187 = vrot.lane.b32.xlu0 %v1190_v8, %s1253_s30  ;;  %v1430_v8 = vpop.f32.mrf.mxu0 }
  0xda   :  { %v1192_v10 = vpop.eup %1191 }
  0xdb   :  { %v182_v11 = vadd.f32 1.0, %v1192_v10  ;;  %v1432_v9 = vpop.f32.mrf.mxu0  ;;  %v147_v10 = vadd.f32 %v1089_v45, %v1312_v5 }
  0xdd   :  { %1193 = vrcp.f32 %v182_v11 }
  0xea   :  { %v1194_v12 = vpop.eup %1193 }
 0x14b   :  { %v188_v13 = vpop.permute.xlu0 %187 }
 0x14c   :  { %v190_v14 = vmul.f32 %v1194_v12, %v188_v13 }
 0x14e   :  { %1195 = vtanh.f32 %v190_v14 }
 0x15b   :  { %v1196_v20 = vpop.eup %1195 }
 0x15c   :  { %193 = vrot.lane.b32.xlu0 %v1196_v20, %s1256_s2 }
 0x160   :  { %287 = vrot.lane.b32.xlu0 %v190_v14, %s1257_s14 }
 0x1ce   :  { %v194_v21 = vpop.permute.xlu0 %193 }
 0x1cf   :  { %v196_v22 = vmul.f32 %v1194_v12, %v194_v21 }
 0x1d1   :  { %203 = vrot.lane.b32.xlu1 %v196_v22, %s1257_s14 }
 0x1d2   :  { %v288_v35 = vpop.permute.xlu0 %287 }
 0x243   :  { %v204_v23 = vpop.permute.xlu1 %203 }
 0x244   :  { %1105 = vmatmul.mubr.msk.f32.vlgmr.msra.gmra.mxu1 %vm205_vm2, %v204_v23 }
 0x245   :  { %1108 = vmatpush3.msra.mxu1 %v1320_v16  ;;  %1115 = vmatprep.mubr.msk.f32.mxu1 %vm1255_vm1, %v1254_v15 }
 0x246   :  { %1109 = vmatprep.subr.mxu1 %v1254_v15 }
 0x247   :  { %1110 = vmatpush3.msra.mxu1 %v1325_v17 }
 0x248   :  { %1111 = vmatprep.subr.mxu1 %v1254_v15 }
 0x249   :  { %1112 = vmatpush3.msra.mxu1 %v1335_v18 }
 0x24a   :  { %1113 = vmatprep.subr.mxu1 %v1254_v15 }
 0x24b   :  { %1114 = vmatpush3.msra.mxu1 %v1344_v19 }
 0x24c   :  { %1129 = vmatprep.subr.mxu1 %v1254_v15 }
 0x304   :  { %v274_v25 = vpop.f32.mrf.mxu1 }
 0x305   :  { %v278_v26 = vadd.f32 %v274_v25, %v137_v24 }
 0x306   :  { %v1106_v27 = vpop.f32.mrf.mxu1 }
 0x307   :  { %1197 = vtanh.f32 %v278_v26  ;;  %v1015_v29 = vmul.f32 -1.442695, %v278_v26 }
 0x309   :  { %1199 = vpow2.f32 %v1015_v29 }
 0x314   :  { %v1198_v28 = vpop.eup %1197 }
 0x315   :  { %292 = vrot.lane.b32.xlu1 %v1198_v28, %s1253_s30 }
 0x316   :  { %v1200_v30 = vpop.eup %1199 }
 0x317   :  { %v282_v31 = vadd.f32 1.0, %v1200_v30 }
 0x319   :  { %1201 = vrcp.f32 %v282_v31 }
 0x326   :  { %v1202_v32 = vpop.eup %1201 }
 0x327   :  { %v290_v36 = vmul.f32 %v1202_v32, %v288_v35 }
 0x387   :  { %v293_v33 = vpop.permute.xlu1 %292 }
 0x388   :  { %v295_v34 = vmul.f32 %v1202_v32, %v293_v33  ;;  %v152_v33 = vadd.f32 %v1312_v5, %v151_v7 }
 0x38a   :  { %297 = vrot.lane.b32.xlu1 %v295_v34, %s1257_s14 }
 0x3fc   :  { %v298_v37 = vpop.permute.xlu1 %297 }
 0x3fd   :  { %v300_v38 = vadd.f32 %v298_v37, %v290_v36 }
 0x3ff   :  { %1203 = vtanh.f32 %v300_v38 }
 0x40c   :  { %v1204_v41 = vpop.eup %1203 }
 0x40d   :  { %303 = vrot.lane.b32.xlu0 %v1204_v41, %s1253_s30 }
 0x47f   :  { %v304_v42 = vpop.permute.xlu0 %303 }
 0x480   :  { %v306_v43 = vmul.f32 %v1202_v32, %v304_v42 }
 0x482   :  { %309 = vrot.lane.b32.xlu1 %v306_v43, %s1257_s14 }
 0x4f4   :  { %v310_v44 = vpop.permute.xlu1 %309 }
 0x4f5   :  { %1116 = vmatmul.mubr.msk.f32.vlgmr.msra.gmra.mxu1 %vm205_vm2, %v310_v44 }
 0x4f6   :  { %1130 = vmatpush3.msra.mxu1 %v1320_v16  ;;  %1137 = vmatprep.mubr.msk.f32.mxu1 %vm1255_vm1, %v1254_v15 }
 0x4f7   :  { %1131 = vmatprep.subr.mxu1 %v1254_v15 }
 0x4f8   :  { %1132 = vmatpush3.msra.mxu1 %v1325_v17 }
 0x4f9   :  { %1133 = vmatprep.subr.mxu1 %v1254_v15 }
 0x4fa   :  { %1134 = vmatpush3.msra.mxu1 %v1335_v18 }
 0x4fb   :  { %1135 = vmatprep.subr.mxu1 %v1254_v15 }
 0x4fc   :  { %1136 = vmatpush3.msra.mxu1 %v1344_v19 }
 0x4fd   :  { %1151 = vmatprep.subr.mxu1 %v1254_v15 }
 0x5b5   :  { %v379_v48 = vpop.f32.mrf.mxu1 }
 0x5b6   :  { %v383_v49 = vadd.f32 %v379_v48, %v142_v47 }
 0x5b7   :  { %v1117_v50 = vpop.f32.mrf.mxu1 }
 0x5b8   :  { %1205 = vtanh.f32 %v383_v49  ;;  %v1017_v52 = vmul.f32 -1.442695, %v383_v49 }
 0x5ba   :  { %1207 = vpow2.f32 %v1017_v52 }
 0x5c5   :  { %v1206_v51 = vpop.eup %1205 }
 0x5c6   :  { %393 = vrot.lane.b32.xlu0 %v1206_v51, %s1253_s30  ;;  %v157_v51 = vadd.f32 %v1428_v6, %v1312_v5 }
 0x5c7   :  { %v1208_v53 = vpop.eup %1207 }
 0x5c8   :  { %v387_v54 = vadd.f32 1.0, %v1208_v53 }
 0x5ca   :  { %1209 = vrcp.f32 %v387_v54 }
 0x5d7   :  { %v1210_v55 = vpop.eup %1209 }
 0x5d8   :  { %v391_v58 = vmul.f32 %v1210_v55, %v300_v38 }
 0x638   :  { %v394_v56 = vpop.permute.xlu0 %393 }
 0x639   :  { %v396_v57 = vmul.f32 %v1210_v55, %v394_v56 }
 0x63b   :  { %398 = vrot.lane.b32.xlu1 %v396_v57, %s1257_s14 }
 0x6ad   :  { %v399_v59 = vpop.permute.xlu1 %398 }
 0x6ae   :  { %v401_v60 = vadd.f32 %v399_v59, %v391_v58 }
 0x6b0   :  { %1211 = vtanh.f32 %v401_v60 }
 0x6bd   :  { %v1212_v1 = vpop.eup %1211 }
 0x6be   :  { %404 = vrot.lane.b32.xlu0 %v1212_v1, %s1253_s30  ;;  %v162_v1 = vadd.f32 %v1312_v5, %v1432_v9 }
 0x730   :  { %v405_v2 = vpop.permute.xlu0 %404 }
 0x731   :  { %v407_v3 = vmul.f32 %v1210_v55, %v405_v2 }
 0x733   :  { %410 = vrot.lane.b32.xlu1 %v407_v3, %s1257_s14 }
 0x7a5   :  { %v411_v4 = vpop.permute.xlu1 %410 }
 0x7a6   :  { %1127 = vmatmul.mubr.msk.f32.vlgmr.msra.gmra.mxu0 %vm205_vm2, %v411_v4 }
 0x7a7   :  { %1141 = vmatpush3.msra.mxu0 %v1320_v16  ;;  %1148 = vmatprep.mubr.msk.f32.mxu0 %vm1255_vm1, %v1254_v15 }
 0x7a8   :  { %1142 = vmatprep.subr.mxu0 %v1254_v15 }
 0x7a9   :  { %1143 = vmatpush3.msra.mxu0 %v1325_v17 }
 0x7aa   :  { %1144 = vmatprep.subr.mxu0 %v1254_v15 }
 0x7ab   :  { %1145 = vmatpush3.msra.mxu0 %v1335_v18 }
 0x7ac   :  { %1146 = vmatprep.subr.mxu0 %v1254_v15 }
 0x7ad   :  { %1147 = vmatpush3.msra.mxu0 %v1344_v19 }
 0x7ae   :  { %1162 = vmatprep.subr.mxu0 %v1254_v15 }
 0x866   :  { %v480_v11 = vpop.f32.mrf.mxu0 }
 0x867   :  { %v484_v12 = vadd.f32 %v480_v11, %v147_v10 }
 0x868   :  { %v1128_v13 = vpop.f32.mrf.mxu0 }
 0x869   :  { %1213 = vtanh.f32 %v484_v12  ;;  %v1019_v20 = vmul.f32 -1.442695, %v484_v12 }
 0x86b   :  { %1215 = vpow2.f32 %v1019_v20 }
 0x876   :  { %v1214_v14 = vpop.eup %1213 }
 0x877   :  { %494 = vrot.lane.b32.xlu0 %v1214_v14, %s1253_s30 }
 0x878   :  { %v1216_v21 = vpop.eup %1215 }
 0x879   :  { %v488_v22 = vadd.f32 1.0, %v1216_v21 }
 0x87b   :  { %1217 = vrcp.f32 %v488_v22 }
 0x888   :  { %v1218_v23 = vpop.eup %1217 }
 0x889   :  { %v492_v26 = vmul.f32 %v1218_v23, %v401_v60 }
 0x8e9   :  { %v495_v24 = vpop.permute.xlu0 %494 }
 0x8ea   :  { %v497_v25 = vmul.f32 %v1218_v23, %v495_v24 }
 0x8ec   :  { %499 = vrot.lane.b32.xlu1 %v497_v25, %s1257_s14 }
 0x95e   :  { %v500_v27 = vpop.permute.xlu1 %499 }
 0x95f   :  { %v502_v28 = vadd.f32 %v500_v27, %v492_v26  ;;  %v167_v26 = vadd.f32 %v1430_v8, %v1312_v5  ;;  %v916_v8 = vld [vmem:[%s1513_s4 + $0x18] sm:$0xff] }
 0x961   :  { %1219 = vtanh.f32 %v502_v28 }
 0x96e   :  { %v1220_v29 = vpop.eup %1219 }
 0x96f   :  { %505 = vrot.lane.b32.xlu0 %v1220_v29, %s1253_s30 }
 0x9e1   :  { %v506_v30 = vpop.permute.xlu0 %505 }
 0x9e2   :  { %v508_v31 = vmul.f32 %v1218_v23, %v506_v30 }
 0x9e4   :  { %511 = vrot.lane.b32.xlu1 %v508_v31, %s1257_s14 }
 0xa56   :  { %v512_v32 = vpop.permute.xlu1 %511 }
 0xa57   :  { %1138 = vmatmul.mubr.msk.f32.vlgmr.msra.gmra.mxu1 %vm205_vm2, %v512_v32 }
 0xa58   :  { %1152 = vmatpush3.msra.mxu1 %v1320_v16  ;;  %1159 = vmatprep.mubr.msk.f32.mxu1 %vm1255_vm1, %v1254_v15 }
 0xa59   :  { %1153 = vmatprep.subr.mxu1 %v1254_v15 }
 0xa5a   :  { %1154 = vmatpush3.msra.mxu1 %v1325_v17 }
 0xa5b   :  { %1155 = vmatprep.subr.mxu1 %v1254_v15 }
 0xa5c   :  { %1156 = vmatpush3.msra.mxu1 %v1335_v18 }
 0xa5d   :  { %1157 = vmatprep.subr.mxu1 %v1254_v15 }
 0xa5e   :  { %1158 = vmatpush3.msra.mxu1 %v1344_v19 }
 0xa5f   :  { %1173 = vmatprep.subr.mxu1 %v1254_v15 }
 0xb17   :  { %v581_v34 = vpop.f32.mrf.mxu1 }
 0xb18   :  { %v585_v35 = vadd.f32 %v581_v34, %v152_v33 }
 0xb19   :  { %v1139_v36 = vpop.f32.mrf.mxu1 }
 0xb1a   :  { %1221 = vtanh.f32 %v585_v35  ;;  %v1021_v38 = vmul.f32 -1.442695, %v585_v35 }
 0xb1c   :  { %1223 = vpow2.f32 %v1021_v38 }
 0xb27   :  { %v1222_v37 = vpop.eup %1221 }
 0xb28   :  { %595 = vrot.lane.b32.xlu0 %v1222_v37, %s1253_s30 }
 0xb29   :  { %v1224_v39 = vpop.eup %1223 }
 0xb2a   :  { %v589_v40 = vadd.f32 1.0, %v1224_v39  ;;  %v915_v39 = vld [vmem:[%s1513_s4 + $0x10] sm:$0xff] }
 0xb2c   :  { %1225 = vrcp.f32 %v589_v40  ;;  %v914_v40 = vld [vmem:[%s1513_s4 + $0x8] sm:$0xff] }
 0xb39   :  { %v1226_v41 = vpop.eup %1225 }
 0xb3a   :  { %v593_v44 = vmul.f32 %v1226_v41, %v502_v28 }
 0xb9a   :  { %v596_v42 = vpop.permute.xlu0 %595 }
 0xb9b   :  { %v598_v43 = vmul.f32 %v1226_v41, %v596_v42 }
 0xb9d   :  { %600 = vrot.lane.b32.xlu1 %v598_v43, %s1257_s14 }
 0xc0f   :  { %v601_v45 = vpop.permute.xlu1 %600 }
 0xc10   :  { %v603_v46 = vadd.f32 %v601_v45, %v593_v44 }
 0xc12   :  { %1227 = vtanh.f32 %v603_v46 }
 0xc1f   :  { %v1228_v47 = vpop.eup %1227 }
 0xc20   :  { %606 = vrot.lane.b32.xlu0 %v1228_v47, %s1253_s30 }
 0xc92   :  { %v607_v48 = vpop.permute.xlu0 %606 }
 0xc93   :  { %v609_v49 = vmul.f32 %v1226_v41, %v607_v48  ;;  %v913_v41 = vld [vmem:[%s1513_s4] sm:$0xff] }
 0xc95   :  { %612 = vrot.lane.b32.xlu1 %v609_v49, %s1257_s14 }
 0xd07   :  { %v613_v50 = vpop.permute.xlu1 %612 }
 0xd08   :  { %1149 = vmatmul.mubr.msk.f32.vlgmr.msra.gmra.mxu0 %vm205_vm2, %v613_v50 }
 0xd09   :  { %1163 = vmatpush3.msra.mxu0 %v1320_v16  ;;  %1170 = vmatprep.mubr.msk.f32.mxu0 %vm1255_vm1, %v1254_v15 }
 0xd0a   :  { %1164 = vmatprep.subr.mxu0 %v1254_v15 }
 0xd0b   :  { %1165 = vmatpush3.msra.mxu0 %v1325_v17 }
 0xd0c   :  { %1166 = vmatprep.subr.mxu0 %v1254_v15 }
 0xd0d   :  { %1167 = vmatpush3.msra.mxu0 %v1335_v18 }
 0xd0e   :  { %1168 = vmatprep.subr.mxu0 %v1254_v15 }
 0xd0f   :  { %1169 = vmatpush3.msra.mxu0 %v1344_v19 }
 0xdc8   :  { %v682_v52 = vpop.f32.mrf.mxu0 }
 0xdc9   :  { %v686_v16 = vadd.f32 %v682_v52, %v157_v51 }
 0xdca   :  { %v1150_v53 = vpop.f32.mrf.mxu0 }
 0xdcb   :  { %1229 = vtanh.f32 %v686_v16  ;;  %v1023_v55 = vmul.f32 -1.442695, %v686_v16 }
 0xdcd   :  { %1231 = vpow2.f32 %v1023_v55 }
 0xdd8   :  { %v1230_v54 = vpop.eup %1229 }
 0xdd9   :  { %696 = vrot.lane.b32.xlu0 %v1230_v54, %s1253_s30 }
 0xdda   :  { %v1232_v17 = vpop.eup %1231 }
 0xddb   :  { %v690_v56 = vadd.f32 1.0, %v1232_v17 }
 0xddd   :  { %1233 = vrcp.f32 %v690_v56 }
 0xdea   :  { %v1234_v18 = vpop.eup %1233 }
 0xdeb   :  { %v694_v19 = vmul.f32 %v1234_v18, %v603_v46  ;;  %v1028_v46 = vld [vmem:[%s1514_s5] ss:$0 sm:$0xff] }
 0xe4b   :  { %v697_v57 = vpop.permute.xlu0 %696 }
 0xe4c   :  { %v699_v58 = vmul.f32 %v1234_v18, %v697_v57 }
 0xe4e   :  { %701 = vrot.lane.b32.xlu1 %v699_v58, %s1257_s14 }
 0xec0   :  { %v702_v59 = vpop.permute.xlu1 %701 }
 0xec1   :  { %v704_v60 = vadd.f32 %v702_v59, %v694_v19 }
 0xec3   :  { %1235 = vtanh.f32 %v704_v60 }
 0xed0   :  { %v1236_v61 = vpop.eup %1235 }
 0xed1   :  { %707 = vrot.lane.b32.xlu0 %v1236_v61, %s1253_s30 }
 0xf43   :  { %v708_v62 = vpop.permute.xlu0 %707 }
 0xf44   :  { %v710_v63 = vmul.f32 %v1234_v18, %v708_v62 }
 0xf46   :  { %713 = vrot.lane.b32.xlu1 %v710_v63, %s1257_s14 }
 0xfb8   :  { %v714_v0 = vpop.permute.xlu1 %713 }
 0xfb9   :  { %1160 = vmatmul.mubr.msk.f32.vlgmr.msra.gmra.mxu1 %vm205_vm2, %v714_v0 }
 0xfba   :  { %1181 = vmatprep.mubr.msk.f32.mxu1 %vm1255_vm1, %v1254_v15  ;;  %1174 = vmatpush3.msra.mxu1 %v916_v8 }
 0xfbb   :  { %1175 = vmatprep.subr.mxu1 %v1254_v15 }
 0xfbc   :  { %1176 = vmatpush3.msra.mxu1 %v915_v39 }
 0xfbd   :  { %1177 = vmatprep.subr.mxu1 %v1254_v15 }
 0xfbe   :  { %1178 = vmatpush3.msra.mxu1 %v914_v40 }
 0xfbf   :  { %1179 = vmatprep.subr.mxu1 %v1254_v15 }
 0xfc0   :  { %1180 = vmatpush3.msra.mxu1 %v913_v41 }
0x1079   :  { %v783_v2 = vpop.f32.mrf.mxu1 }
0x107a   :  { %v787_v3 = vadd.f32 %v783_v2, %v162_v1 }
0x107b   :  { %v1161_v4 = vpop.f32.mrf.mxu1 }
0x107c   :  { %1237 = vtanh.f32 %v787_v3  ;;  %v1025_v7 = vmul.f32 -1.442695, %v787_v3 }
0x107e   :  { %1239 = vpow2.f32 %v1025_v7 }
0x1089   :  { %v1238_v6 = vpop.eup %1237 }
0x108a   :  { %797 = vrot.lane.b32.xlu0 %v1238_v6, %s1253_s30 }
0x108b   :  { %v1240_v10 = vpop.eup %1239 }
0x108c   :  { %v791_v11 = vadd.f32 1.0, %v1240_v10 }
0x108e   :  { %1241 = vrcp.f32 %v791_v11 }
0x109b   :  { %v1242_v12 = vpop.eup %1241 }
0x109c   :  { %v795_v20 = vmul.f32 %v1242_v12, %v704_v60 }
0x10fc   :  { %v798_v13 = vpop.permute.xlu0 %797 }
0x10fd   :  { %v800_v14 = vmul.f32 %v1242_v12, %v798_v13 }
0x10ff   :  { %802 = vrot.lane.b32.xlu1 %v800_v14, %s1257_s14 }
0x1171   :  { %v803_v21 = vpop.permute.xlu1 %802 }
0x1172   :  { %v805_v9 = vadd.f32 %v803_v21, %v795_v20 }
0x1174   :  { %1243 = vtanh.f32 %v805_v9 }
0x1181   :  { %v1244_v22 = vpop.eup %1243 }
0x1182   :  { %808 = vrot.lane.b32.xlu0 %v1244_v22, %s1253_s30 }
0x11f4   :  { %v809_v23 = vpop.permute.xlu0 %808 }
0x11f5   :  { %v811_v24 = vmul.f32 %v1242_v12, %v809_v23 }
0x11f7   :  { %814 = vrot.lane.b32.xlu1 %v811_v24, %s1257_s14 }
0x1269   :  { %v815_v25 = vpop.permute.xlu1 %814 }
0x126a   :  { %1171 = vmatmul.mubr.msk.f32.vlgmr.msra.gmra.mxu0 %vm205_vm2, %v815_v25 }
0x132a   :  { %v884_v27 = vpop.f32.mrf.mxu0 }
0x132b   :  { %v888_v28 = vadd.f32 %v884_v27, %v167_v26 }
0x132c   :  { %v1172_v29 = vpop.f32.mrf.mxu0 }
0x132d   :  { %1245 = vtanh.f32 %v888_v28  ;;  %v1027_v31 = vmul.f32 -1.442695, %v888_v28 }
0x132f   :  { %1247 = vpow2.f32 %v1027_v31 }
0x133a   :  { %v1246_v30 = vpop.eup %1245 }
0x133b   :  { %898 = vrot.lane.b32.xlu0 %v1246_v30, %s1253_s30 }
0x133c   :  { %v1248_v32 = vpop.eup %1247 }
0x133d   :  { %v892_v33 = vadd.f32 1.0, %v1248_v32 }
0x133f   :  { %1249 = vrcp.f32 %v892_v33 }
0x134c   :  { %v1250_v34 = vpop.eup %1249 }
0x134d   :  { %v896_v37 = vmul.f32 %v1250_v34, %v805_v9 }
0x13ad   :  { %v899_v35 = vpop.permute.xlu0 %898 }
0x13ae   :  { %v901_v36 = vmul.f32 %v1250_v34, %v899_v35 }
0x13b0   :  { %903 = vrot.lane.b32.xlu1 %v901_v36, %s1257_s14 }
0x1422   :  { %v904_v38 = vpop.permute.xlu1 %903 }
0x1423   :  { %v906_v5 = vadd.f32 %v904_v38, %v896_v37 }
0x1425   :  { %1251 = vtanh.f32 %v906_v5 }
0x1432   :  { %v1252_v42 = vpop.eup %1251 }
0x1433   :  { %909 = vrot.lane.b32.xlu0 %v1252_v42, %s1253_s30 }
0x14a5   :  { %v910_v43 = vpop.permute.xlu0 %909 }
0x14a6   :  { %v912_v44 = vmul.f32 %v1250_v34, %v910_v43 }
0x14a8   :  { %925 = vrot.lane.b32.xlu1 %v912_v44, %s1257_s14 }
0x151a   :  { %v926_v45 = vpop.permute.xlu1 %925 }
0x151b   :  { %1182 = vmatmul.mubr.msk.f32.vlgmr.msra.gmra.mxu1 %vm205_vm2, %v926_v45 }
0x15db   :  { %v995_v47 = vpop.f32.mrf.mxu1 }
0x15dc   :  { %v996_v48 = vadd.f32 %v1028_v46, %v995_v47 }
0x15dd   :  { %v1183_v49 = vpop.f32.mrf.mxu1 }
0x15de   :  { %999 = vst [vmem:[%s1515_s6] sm:$0xff] %v996_v48 }

</bundles_post_ra>
